<compile_context>
chip_gen: v7x
topology: tpu7x:2x2x1
jax: 0.10.0
libtpu: 0.0.40
codegen_flags: <defaults>
</compile_context>

<pallas_src>
import functools

import jax
import jax.numpy as jnp
import numpy as np
from jax.experimental import pallas as pl
from jax.experimental.pallas import tpu as pltpu


def _hardswish(x):
    # PyTorch nn.Hardswish: x * relu6(x + 3) / 6   (used by the reference only)
    return x * jnp.clip(x + 3.0, 0.0, 6.0) * (1.0 / 6.0)


def _irb_kernel(x_ref, w1_ref, b1_ref, wd_ref, bd_ref, w2_ref, b2_ref, m_ref,
                o_ref, *, W):
    """Channel-major IRB forward for one block of BT images.

    Shapes (L = BT * H * W):
      x_ref : (C, L)           w1_ref : (hidden, C)     b1_ref : (hidden, 1)
      wd_ref: (hidden, 9)      bd_ref : (hidden, 1)     (wd pre-scaled by 1/6)
      w2_ref: (c_out, hidden)  b2_ref : (c_out, 1)      (w2 pre-scaled by 1/6)
      m_ref : (4, L)  precomputed boundary masks [col_l, col_r, row_u, row_d]
      o_ref : (c_out, L)
    """
    L = x_ref.shape[1]

    # ---- fc1 (1x1 conv == matmul over channels) --------------------------
    # Native-dtype operands; f32 accumulation via preferred_element_type.
    y1 = jnp.dot(w1_ref[...], x_ref[...], preferred_element_type=jnp.float32)
    y1 = y1 + b1_ref[...]
    # 6 * Hardswish(y1): the 1/6 is folded into wd (exact; dw-conv is linear).
    y1 = y1 * jnp.clip(y1 + 3.0, 0.0, 6.0)

    # Precomputed per-lane boundary masks (f32 0/1), constant across steps.
    m_cl = m_ref[0:1, :]          # valid for column offset d = -1 (w >= 1)
    m_cr = m_ref[1:2, :]          # valid for column offset d = +1 (w <= W-2)
    m_ru = m_ref[2:3, :]          # valid for row offset d = -1 (h >= 1)
    m_rd = m_ref[3:4, :]          # valid for row offset d = +1 (h <= H-2)

    # ---- depthwise 3x3, padding=1, in registers --------------------------
    # output[n] reads input[n + d]; pltpu.roll(x, s)[i] == x[(i - s) % L],
    # so shift = (-d) % L.  Wrap / row / image bleed is killed by the masks.
    wd = wd_ref[...]
    col_l = pltpu.roll(y1, shift=1, axis=1) * m_cl        # column d = -1
    col_c = y1                                            # column d =  0
    col_r = pltpu.roll(y1, shift=L - 1, axis=1) * m_cr    # column d = +1

    acc = None
    for dy in range(3):
        d = dy - 1
        k = 3 * dy
        # Per-channel weighted sum over the 3 column taps of this kernel row.
        p = (col_l * wd[:, k + 0:k + 1]
             + col_c * wd[:, k + 1:k + 2]
             + col_r * wd[:, k + 2:k + 3])
        if d == -1:
            p = pltpu.roll(p, shift=W, axis=1) * m_ru      # shift by one row
        elif d == 1:
            p = pltpu.roll(p, shift=L - W, axis=1) * m_rd
        acc = p if acc is None else acc + p

    y2 = acc + bd_ref[...]
    # 6 * Hardswish(y2): the 1/6 is folded into w2 (exact; fc2 is linear).
    y2 = y2 * jnp.clip(y2 + 3.0, 0.0, 6.0)
    # TODO(synk): optional bf16 depthwise intermediates on v6e/v7x to halve
    # vreg pressure (kept f32 here so the 1e-4 check holds on all generations).

    # ---- fc2 (1x1 conv == matmul over channels) --------------------------
    out = jnp.dot(w2_ref[...], y2, preferred_element_type=jnp.float32)
    o_ref[...] = (out + b2_ref[...]).astype(o_ref.dtype)


def _pick_block_images(B, N, max_images_per_block):
    """Images per grid step.

    Bounded (default 4) to keep ~5 live (hidden, L) f32 arrays inside the
    vreg file; prefers a grid of >= 2 blocks so both v7x TensorCores get work;
    falls back to a single full-extent block if bt*N is not lane-aligned.
    """
    bt = max(1, min(max_images_per_block, B))
    if B >= 2 and -(-B // bt) < 2:
        bt = -(-B // 2)
    if (bt * N) % 128 != 0:        # (8,128) rule: multiple of 128 or full dim
        bt = B
    return bt


def irb_forward_channel_major(x_cm, B, H, W, params, *, max_images_per_block=4):
    """Channel-major entry point: x_cm (C, B*N) -> (c_out, B*N).

    Prefer this when adjacent ops can produce / consume the channel-major
    layout so the (B,N,C)<->(C,B*N) HBM transposes in irb_forward are elided.
    """
    w1, b1, wd, bd, w2, b2 = params
    C = x_cm.shape[0]
    N = H * W
    hidden = w1.shape[1]
    c_out = w2.shape[1]

    bt = _pick_block_images(B, N, max_images_per_block)
    n_blocks = -(-B // bt)
    B_pad = bt * n_blocks
    L = bt * N

    if B_pad > B:
        # Padded phantom images never bleed into real ones: every cross-lane
        # read is killed by the per-image h/w boundary masks; output cropped.
        x_cm = jnp.pad(x_cm, ((0, 0), (0, (B_pad - B) * N)))

    # Channel-major weights; both Hardswish 1/6 factors folded in (exact).
    w1_cm = jnp.transpose(w1)                                       # (hidden, C)
    wd_cm = jnp.transpose(wd, (2, 0, 1)).reshape(hidden, 9) * (1.0 / 6.0)
    w2_cm = jnp.transpose(w2) * (1.0 / 6.0)                         # (c_out, hidden)
    b1_cm = b1.reshape(hidden, 1)
    bd_cm = bd.reshape(hidden, 1)
    b2_cm = b2.reshape(c_out, 1)

    # Precomputed per-lane boundary masks; identical for every grid step.
    n_loc = np.arange(N)
    h_idx, w_idx = n_loc // W, n_loc % W
    masks_np = np.stack([(w_idx >= 1), (w_idx <= W - 2),
                         (h_idx >= 1), (h_idx <= H - 2)],
                        axis=0).astype(np.float32)
    masks = jnp.asarray(np.tile(masks_np, (1, bt)))                 # (4, L)

    kernel = functools.partial(_irb_kernel, W=W)

    # Explicit VMEM budget (v7x: 64 MiB physical / 32 MiB default scoped).
    itemsize = max(jnp.dtype(x_cm.dtype).itemsize, 2)
    vmem_est = (2 * (C + c_out) * L * itemsize        # double-buffered x / out
                + 2 * 4 * L * 4                       # masks
                + 2 * (hidden * (C + 9 + 2) + c_out * (hidden + 1)) * 4
                + 8 * hidden * L * 4)                 # intermediate headroom
    vmem_limit = int(min(max(2 * vmem_est, 4 << 20), 64 << 20))

    grid_spec = pltpu.PrefetchScalarGridSpec(
        num_scalar_prefetch=0,
        grid=(n_blocks,),
        in_specs=[
            pl.BlockSpec((C, L), lambda i: (0, i)),
            pl.BlockSpec((hidden, C), lambda i: (0, 0)),
            pl.BlockSpec((hidden, 1), lambda i: (0, 0)),
            pl.BlockSpec((hidden, 9), lambda i: (0, 0)),
            pl.BlockSpec((hidden, 1), lambda i: (0, 0)),
            pl.BlockSpec((c_out, hidden), lambda i: (0, 0)),
            pl.BlockSpec((c_out, 1), lambda i: (0, 0)),
            pl.BlockSpec((4, L), lambda i: (0, 0)),
        ],
        out_specs=pl.BlockSpec((c_out, L), lambda i: (0, i)),
    )

    out_cm = pl.pallas_call(
        kernel,
        out_shape=jax.ShapeDtypeStruct((c_out, B_pad * N), x_cm.dtype),
        grid_spec=grid_spec,
        compiler_params=pltpu.CompilerParams(
            dimension_semantics=("parallel",),
            vmem_limit_bytes=vmem_limit),
    )(x_cm, w1_cm, b1_cm, wd_cm, bd_cm, w2_cm, b2_cm, masks)

    if B_pad > B:
        out_cm = out_cm[:, :B * N]
    return out_cm


def irb_forward(x, H, W, params, *, max_images_per_block=4):
    """x: (B, N, C) with N == H * W.  Returns (B, N, C_out)."""
    B, N, C = x.shape
    assert N == H * W
    c_out = params[4].shape[1]
    # NOTE: these two transposes are full HBM round trips as separate XLA ops;
    # for memory-bound sizes prefer irb_forward_channel_major and fuse the
    # layout with producer/consumer ops.
    x_cm = jnp.transpose(x, (2, 0, 1)).reshape(C, B * N)
    out_cm = irb_forward_channel_major(
        x_cm, B, H, W, params, max_images_per_block=max_images_per_block)
    return jnp.transpose(out_cm.reshape(c_out, B, N), (1, 2, 0))


def irb_reference(x, H, W, params):
    """Pure-JAX reference using lax convolutions in NCHW (mirrors PyTorch)."""
    w1, b1, wd, bd, w2, b2 = params
    B, N, C = x.shape
    hidden = w1.shape[1]
    c_out = w2.shape[1]

    xi = jnp.transpose(x, (0, 2, 1)).reshape(B, C, H, W)

    k1 = jnp.transpose(w1, (1, 0))[:, :, None, None]            # (hidden, C, 1, 1)
    y = jax.lax.conv_general_dilated(
        xi, k1, (1, 1), "VALID",
        dimension_numbers=("NCHW", "OIHW", "NCHW")) + b1.reshape(1, hidden, 1, 1)
    y = _hardswish(y)

    kd = jnp.transpose(wd, (2, 0, 1))[:, None, :, :]             # (hidden, 1, 3, 3)
    y = jax.lax.conv_general_dilated(
        y, kd, (1, 1), ((1, 1), (1, 1)),
        dimension_numbers=("NCHW", "OIHW", "NCHW"),
        feature_group_count=hidden) + bd.reshape(1, hidden, 1, 1)
    y = _hardswish(y)

    k2 = jnp.transpose(w2, (1, 0))[:, :, None, None]             # (c_out, hidden, 1, 1)
    y = jax.lax.conv_general_dilated(
        y, k2, (1, 1), "VALID",
        dimension_numbers=("NCHW", "OIHW", "NCHW")) + b2.reshape(1, c_out, 1, 1)

    return jnp.transpose(y.reshape(B, c_out, H * W), (0, 2, 1))


if __name__ == "__main__":
    # Small shapes consistent with the module: B=4, C=4, hidden=8, H=W=16.
    # Default max_images_per_block=4 -> bt=2 (grid kept >= 2 blocks), grid=(2,).
    B, C, hidden, H, W = 4, 4, 8, 16, 16
    c_out = C  # out_features defaults to in_features (required by the reshape)
    N = H * W

    key = jax.random.PRNGKey(0)
    keys = jax.random.split(key, 7)
    x = jax.random.normal(keys[0], (B, N, C), jnp.float32)

    # Deterministic synthetic parameters (shapes from the module __init__).
    w1 = jax.random.normal(keys[1], (C, hidden), jnp.float32) * 0.3
    b1 = jax.random.normal(keys[2], (hidden,), jnp.float32) * 0.1
    wd = jax.random.normal(keys[3], (3, 3, hidden), jnp.float32) * 0.3
    bd = jax.random.normal(keys[4], (hidden,), jnp.float32) * 0.1
    w2 = jax.random.normal(keys[5], (hidden, c_out), jnp.float32) * 0.3
    b2 = jax.random.normal(keys[6], (c_out,), jnp.float32) * 0.1
    params = (w1, b1, wd, bd, w2, b2)

    out = irb_forward(x, H, W, params)
    out = jax.block_until_ready(out)

    ref = jax.block_until_ready(irb_reference(x, H, W, params))
    np.testing.assert_allclose(np.asarray(out), np.asarray(ref),
                               atol=1e-4, rtol=1e-4)

    print("KERNEL_OK")
</pallas_src>

<mosaic_0001>
module attributes {stable_mosaic.version = 11 : i64} {
  func.func @_irb_kernel(%arg0: i32, %arg1: memref<4x512xf32, #tpu.memory_space<vmem>>, %arg2: memref<8x4xf32, #tpu.memory_space<vmem>>, %arg3: memref<8x1xf32, #tpu.memory_space<vmem>>, %arg4: memref<8x9xf32, #tpu.memory_space<vmem>>, %arg5: memref<8x1xf32, #tpu.memory_space<vmem>>, %arg6: memref<4x8xf32, #tpu.memory_space<vmem>>, %arg7: memref<4x1xf32, #tpu.memory_space<vmem>>, %arg8: memref<4x512xf32, #tpu.memory_space<vmem>>, %arg9: memref<4x512xf32, #tpu.memory_space<vmem>>) attributes {dimension_semantics = [#tpu.dimension_semantics<parallel>], iteration_bounds = array<i64: 2>, scalar_prefetch = 0 : i64, scratch_operands = 0 : i64, tpu.core_type = #tpu.core_type<tc>, window_params = [{transform_indices = @transform_0, window_bounds = array<i64: 4, 512>}, {pipeline_mode = #tpu.pipeline_mode<synchronous>, transform_indices = @transform_1, window_bounds = array<i64: 8, 4>}, {pipeline_mode = #tpu.pipeline_mode<synchronous>, transform_indices = @transform_2, window_bounds = array<i64: 8, 1>}, {pipeline_mode = #tpu.pipeline_mode<synchronous>, transform_indices = @transform_3, window_bounds = array<i64: 8, 9>}, {pipeline_mode = #tpu.pipeline_mode<synchronous>, transform_indices = @transform_4, window_bounds = array<i64: 8, 1>}, {pipeline_mode = #tpu.pipeline_mode<synchronous>, transform_indices = @transform_5, window_bounds = array<i64: 4, 8>}, {pipeline_mode = #tpu.pipeline_mode<synchronous>, transform_indices = @transform_6, window_bounds = array<i64: 4, 1>}, {pipeline_mode = #tpu.pipeline_mode<synchronous>, transform_indices = @transform_7, window_bounds = array<i64: 4, 512>}, {transform_indices = @transform_8, window_bounds = array<i64: 4, 512>}]} {
    %c0 = arith.constant 0 : index
    %c0_0 = arith.constant 0 : index
    %0 = vector.load %arg2[%c0, %c0_0] : memref<8x4xf32, #tpu.memory_space<vmem>>, vector<8x4xf32>
    %c0_1 = arith.constant 0 : index
    %c0_2 = arith.constant 0 : index
    %1 = vector.load %arg1[%c0_1, %c0_2] : memref<4x512xf32, #tpu.memory_space<vmem>>, vector<4x512xf32>
    %cst = arith.constant dense<0.000000e+00> : vector<8x512xf32>
    %2 = tpu.matmul %0, %1, %cst {dimension_numbers = #tpu.dot_dimension_numbers<[1], [0], [0], [1], [0, 0, 1, 1], [], []>} : vector<8x4xf32>, vector<4x512xf32>, vector<8x512xf32> -> vector<8x512xf32>
    %c0_3 = arith.constant 0 : index
    %c0_4 = arith.constant 0 : index
    %3 = vector.load %arg3[%c0_3, %c0_4] : memref<8x1xf32, #tpu.memory_space<vmem>>, vector<8x1xf32>
    %4 = vector.broadcast %3 : vector<8x1xf32> to vector<8x512xf32>
    %5 = arith.addf %2, %4 : vector<8x512xf32>
    %cst_5 = arith.constant 3.000000e+00 : f32
    %6 = vector.broadcast %cst_5 : f32 to vector<8x512xf32>
    %7 = arith.addf %5, %6 : vector<8x512xf32>
    %cst_6 = arith.constant 0.000000e+00 : f32
    %cst_7 = arith.constant 6.000000e+00 : f32
    %8 = vector.broadcast %cst_6 : f32 to vector<8x512xf32>
    %9 = arith.maximumf %8, %7 : vector<8x512xf32>
    %10 = vector.broadcast %cst_7 : f32 to vector<8x512xf32>
    %11 = arith.minimumf %10, %9 : vector<8x512xf32>
    %12 = arith.mulf %5, %11 : vector<8x512xf32>
    %c0_8 = arith.constant 0 : index
    %c0_9 = arith.constant 0 : index
    %13 = vector.load %arg8[%c0_8, %c0_9] : memref<4x512xf32, #tpu.memory_space<vmem>>, vector<1x512xf32>
    %c1 = arith.constant 1 : index
    %c0_10 = arith.constant 0 : index
    %14 = vector.load %arg8[%c1, %c0_10] : memref<4x512xf32, #tpu.memory_space<vmem>>, vector<1x512xf32>
    %c2 = arith.constant 2 : index
    %c0_11 = arith.constant 0 : index
    %15 = vector.load %arg8[%c2, %c0_11] : memref<4x512xf32, #tpu.memory_space<vmem>>, vector<1x512xf32>
    %c3 = arith.constant 3 : index
    %c0_12 = arith.constant 0 : index
    %16 = vector.load %arg8[%c3, %c0_12] : memref<4x512xf32, #tpu.memory_space<vmem>>, vector<1x512xf32>
    %c0_13 = arith.constant 0 : index
    %c0_14 = arith.constant 0 : index
    %17 = vector.load %arg4[%c0_13, %c0_14] : memref<8x9xf32, #tpu.memory_space<vmem>>, vector<8x9xf32>
    %c1_i32 = arith.constant 1 : i32
    %18 = tpu.dynamic_rotate %12 by %c1_i32 dim 1 : vector<8x512xf32>, i32 -> vector<8x512xf32>
    %19 = vector.broadcast %13 : vector<1x512xf32> to vector<8x512xf32>
    %20 = arith.mulf %18, %19 : vector<8x512xf32>
    %c511_i32 = arith.constant 511 : i32
    %21 = tpu.dynamic_rotate %12 by %c511_i32 dim 1 : vector<8x512xf32>, i32 -> vector<8x512xf32>
    %22 = vector.broadcast %14 : vector<1x512xf32> to vector<8x512xf32>
    %23 = arith.mulf %21, %22 : vector<8x512xf32>
    %24 = vector.extract_strided_slice %17 {offsets = [0, 0], sizes = [8, 1], strides = [1, 1]} : vector<8x9xf32> to vector<8x1xf32>
    %25 = vector.broadcast %24 : vector<8x1xf32> to vector<8x512xf32>
    %26 = arith.mulf %20, %25 : vector<8x512xf32>
    %27 = vector.extract_strided_slice %17 {offsets = [0, 1], sizes = [8, 1], strides = [1, 1]} : vector<8x9xf32> to vector<8x1xf32>
    %28 = vector.broadcast %27 : vector<8x1xf32> to vector<8x512xf32>
    %29 = arith.mulf %12, %28 : vector<8x512xf32>
    %30 = arith.addf %26, %29 : vector<8x512xf32>
    %31 = vector.extract_strided_slice %17 {offsets = [0, 2], sizes = [8, 1], strides = [1, 1]} : vector<8x9xf32> to vector<8x1xf32>
    %32 = vector.broadcast %31 : vector<8x1xf32> to vector<8x512xf32>
    %33 = arith.mulf %23, %32 : vector<8x512xf32>
    %34 = arith.addf %30, %33 : vector<8x512xf32>
    %c16_i32 = arith.constant 16 : i32
    %35 = tpu.dynamic_rotate %34 by %c16_i32 dim 1 : vector<8x512xf32>, i32 -> vector<8x512xf32>
    %36 = vector.broadcast %15 : vector<1x512xf32> to vector<8x512xf32>
    %37 = arith.mulf %35, %36 : vector<8x512xf32>
    %38 = vector.extract_strided_slice %17 {offsets = [0, 3], sizes = [8, 1], strides = [1, 1]} : vector<8x9xf32> to vector<8x1xf32>
    %39 = vector.broadcast %38 : vector<8x1xf32> to vector<8x512xf32>
    %40 = arith.mulf %20, %39 : vector<8x512xf32>
    %41 = vector.extract_strided_slice %17 {offsets = [0, 4], sizes = [8, 1], strides = [1, 1]} : vector<8x9xf32> to vector<8x1xf32>
    %42 = vector.broadcast %41 : vector<8x1xf32> to vector<8x512xf32>
    %43 = arith.mulf %12, %42 : vector<8x512xf32>
    %44 = arith.addf %40, %43 : vector<8x512xf32>
    %45 = vector.extract_strided_slice %17 {offsets = [0, 5], sizes = [8, 1], strides = [1, 1]} : vector<8x9xf32> to vector<8x1xf32>
    %46 = vector.broadcast %45 : vector<8x1xf32> to vector<8x512xf32>
    %47 = arith.mulf %23, %46 : vector<8x512xf32>
    %48 = arith.addf %44, %47 : vector<8x512xf32>
    %49 = arith.addf %37, %48 : vector<8x512xf32>
    %50 = vector.extract_strided_slice %17 {offsets = [0, 6], sizes = [8, 1], strides = [1, 1]} : vector<8x9xf32> to vector<8x1xf32>
    %51 = vector.broadcast %50 : vector<8x1xf32> to vector<8x512xf32>
    %52 = arith.mulf %20, %51 : vector<8x512xf32>
    %53 = vector.extract_strided_slice %17 {offsets = [0, 7], sizes = [8, 1], strides = [1, 1]} : vector<8x9xf32> to vector<8x1xf32>
    %54 = vector.broadcast %53 : vector<8x1xf32> to vector<8x512xf32>
    %55 = arith.mulf %12, %54 : vector<8x512xf32>
    %56 = arith.addf %52, %55 : vector<8x512xf32>
    %57 = vector.extract_strided_slice %17 {offsets = [0, 8], sizes = [8, 1], strides = [1, 1]} : vector<8x9xf32> to vector<8x1xf32>
    %58 = vector.broadcast %57 : vector<8x1xf32> to vector<8x512xf32>
    %59 = arith.mulf %23, %58 : vector<8x512xf32>
    %60 = arith.addf %56, %59 : vector<8x512xf32>
    %c496_i32 = arith.constant 496 : i32
    %61 = tpu.dynamic_rotate %60 by %c496_i32 dim 1 : vector<8x512xf32>, i32 -> vector<8x512xf32>
    %62 = vector.broadcast %16 : vector<1x512xf32> to vector<8x512xf32>
    %63 = arith.mulf %61, %62 : vector<8x512xf32>
    %64 = arith.addf %49, %63 : vector<8x512xf32>
    %c0_15 = arith.constant 0 : index
    %c0_16 = arith.constant 0 : index
    %65 = vector.load %arg5[%c0_15, %c0_16] : memref<8x1xf32, #tpu.memory_space<vmem>>, vector<8x1xf32>
    %66 = vector.broadcast %65 : vector<8x1xf32> to vector<8x512xf32>
    %67 = arith.addf %64, %66 : vector<8x512xf32>
    %cst_17 = arith.constant 3.000000e+00 : f32
    %68 = vector.broadcast %cst_17 : f32 to vector<8x512xf32>
    %69 = arith.addf %67, %68 : vector<8x512xf32>
    %cst_18 = arith.constant 0.000000e+00 : f32
    %cst_19 = arith.constant 6.000000e+00 : f32
    %70 = vector.broadcast %cst_18 : f32 to vector<8x512xf32>
    %71 = arith.maximumf %70, %69 : vector<8x512xf32>
    %72 = vector.broadcast %cst_19 : f32 to vector<8x512xf32>
    %73 = arith.minimumf %72, %71 : vector<8x512xf32>
    %74 = arith.mulf %67, %73 : vector<8x512xf32>
    %c0_20 = arith.constant 0 : index
    %c0_21 = arith.constant 0 : index
    %75 = vector.load %arg6[%c0_20, %c0_21] : memref<4x8xf32, #tpu.memory_space<vmem>>, vector<4x8xf32>
    %cst_22 = arith.constant dense<0.000000e+00> : vector<4x512xf32>
    %76 = tpu.matmul %75, %74, %cst_22 {dimension_numbers = #tpu.dot_dimension_numbers<[1], [0], [0], [1], [0, 0, 1, 1], [], []>} : vector<4x8xf32>, vector<8x512xf32>, vector<4x512xf32> -> vector<4x512xf32>
    %c0_23 = arith.constant 0 : index
    %c0_24 = arith.constant 0 : index
    %77 = vector.load %arg7[%c0_23, %c0_24] : memref<4x1xf32, #tpu.memory_space<vmem>>, vector<4x1xf32>
    %78 = vector.broadcast %77 : vector<4x1xf32> to vector<4x512xf32>
    %79 = arith.addf %76, %78 : vector<4x512xf32>
    %c0_25 = arith.constant 0 : index
    %c0_26 = arith.constant 0 : index
    %80 = vector.load %arg9[%c0_25, %c0_26] : memref<4x512xf32, #tpu.memory_space<vmem>>, vector<4x512xf32>
    tpu.vector_store %arg9[%c0_25, %c0_26], %79 {strides = array<i32>} : memref<4x512xf32, #tpu.memory_space<vmem>>, vector<4x512xf32>,
    return
  }
  func.func @transform_0(%arg0: i32) -> (i32, i32) {
    %c0_i32 = arith.constant 0 : i32
    %c0_i32_0 = arith.constant 0 : i32
    return %c0_i32, %arg0 : i32, i32
  }
  func.func @transform_1(%arg0: i32) -> (i32, i32) {
    %c0_i32 = arith.constant 0 : i32
    %c0_i32_0 = arith.constant 0 : i32
    %c0_i32_1 = arith.constant 0 : i32
    return %c0_i32, %c0_i32_0 : i32, i32
  }
  func.func @transform_2(%arg0: i32) -> (i32, i32) {
    %c0_i32 = arith.constant 0 : i32
    %c0_i32_0 = arith.constant 0 : i32
    %c0_i32_1 = arith.constant 0 : i32
    return %c0_i32, %c0_i32_0 : i32, i32
  }
  func.func @transform_3(%arg0: i32) -> (i32, i32) {
    %c0_i32 = arith.constant 0 : i32
    %c0_i32_0 = arith.constant 0 : i32
    %c0_i32_1 = arith.constant 0 : i32
    return %c0_i32, %c0_i32_0 : i32, i32
  }
  func.func @transform_4(%arg0: i32) -> (i32, i32) {
    %c0_i32 = arith.constant 0 : i32
    %c0_i32_0 = arith.constant 0 : i32
    %c0_i32_1 = arith.constant 0 : i32
    return %c0_i32, %c0_i32_0 : i32, i32
  }
  func.func @transform_5(%arg0: i32) -> (i32, i32) {
    %c0_i32 = arith.constant 0 : i32
    %c0_i32_0 = arith.constant 0 : i32
    %c0_i32_1 = arith.constant 0 : i32
    return %c0_i32, %c0_i32_0 : i32, i32
  }
  func.func @transform_6(%arg0: i32) -> (i32, i32) {
    %c0_i32 = arith.constant 0 : i32
    %c0_i32_0 = arith.constant 0 : i32
    %c0_i32_1 = arith.constant 0 : i32
    return %c0_i32, %c0_i32_0 : i32, i32
  }
  func.func @transform_7(%arg0: i32) -> (i32, i32) {
    %c0_i32 = arith.constant 0 : i32
    %c0_i32_0 = arith.constant 0 : i32
    %c0_i32_1 = arith.constant 0 : i32
    return %c0_i32, %c0_i32_0 : i32, i32
  }
  func.func @transform_8(%arg0: i32) -> (i32, i32) {
    %c0_i32 = arith.constant 0 : i32
    %c0_i32_0 = arith.constant 0 : i32
    return %c0_i32, %arg0 : i32, i32
  }
}

</mosaic_0001>

<bundles_post_ra>
// kernel: tpu_custom_call.1
= control target key start
LH: loop header
LB: loop body
LE: loop exit
PB: predicated region body
PF: predicated region fallthrough
CT: control target
= control target key end

     0   :  { %13 = vsyncpa [#allocation3], 0  ;;  %s1622_s0 = inlined_call_operand.vmem [shape: f32[4,1024], index: 0, kind: input, shape index: {}]   ;;  %s1623_s1 = inlined_call_operand.vmem [shape: f32[8,4], index: 1, kind: input, shape index: {}]   ;;  %s1624_s2 = inlined_call_operand.vmem [shape: f32[8,1], index: 2, kind: input, shape index: {}]   ;;  %s1625_s3 = inlined_call_operand.hbm [shape: f32[8,9], index: 3, kind: input, shape index: {}]   ;;  %s1626_s4 = inlined_call_operand.vmem [shape: f32[8,1], index: 4, kind: input, shape index: {}]   ;;  %s1627_s5 = inlined_call_operand.vmem [shape: f32[4,8], index: 5, kind: input, shape index: {}]   ;;  %s1628_s6 = inlined_call_operand.vmem [shape: f32[4,1], index: 6, kind: input, shape index: {}]   ;;  %s1629_s7 = inlined_call_operand.vmem [shape: f32[4,512], index: 7, kind: input, shape index: {}]   ;;  %s1630_s8 = inlined_call_operand.hbm [shape: f32[4,1024], index: 8, kind: output, shape index: {}]  }
   0x1   :  { %14 = vsyncpa [#allocation4], 0 }
   0x2   :  { %16 = vsyncpa [#allocation4 + $0x1], 0  ;;  %s1305_s27 = smov 0   ;;  %s1307_s28 = smov 0  }
   0x3   :  { %s1309_s29 = smov 0   ;;  %s1311_s30 = smov 0  }
   0x4 LB: > { %s1326_s9 = sadd.s32 4294967295, %s1242_s30   ;;  %s1046_s10 = sadd.s32 4294967294, %s1242_s30   ;;  %s1242_s30 = sphi %s1311_s30, %s1646_s30   ;;  %s1238_s29 = sphi %s1309_s29, %s1645_s29   ;;  %s1234_s28 = sphi %s1307_s28, %s1644_s28   ;;  %s1230_s27 = sphi %s1305_s27, %s1643_s27  }
   0x5   : > { %s1330_s11 = sadd.s32 1, %s1242_s30   ;;  %s202_s12 = sadd.s32 1, %s1238_s29 }
   0x6   : > { %s199_s13 = ssub.s32 %s1242_s30, %s1330_s11  ;;  %p212_p0 = scmp.ne.s32.totalorder %s1238_s29, %s1234_s28 }
   0x7   : > { %p200_p1 = scmp.eq.s32.totalorder %s199_s13, 0  ;;  %p213_p2 = scmp.eq.s32.totalorder %s1326_s9, 1 }
   0x8   : > { %p218_p3 = scmp.ne.s32.totalorder %s1234_s28, %s1230_s27  ;;  %p219_p4 = scmp.eq.s32.totalorder %s1046_s10, 1 }
   0x9   : > { %s1341_s14 = scalar_select %p200_p1, %s1238_s29, %s202_s12  }
   0xa   : > { %p1343_p5 = por %p213_p2, %p212_p0  ;;  %p1347_p6 = por %p219_p4, %p218_p3 }
   0xb   : > { %p1047_p7 = scmp.ge.s32.totalorder %s1242_s30, 1  ;;  %p226_p8 = scmp.lt.s32.totalorder %s1242_s30, 3 }
   0xc   : > { %s1634_s15 = scalar_select %p1343_p5, 1, 0 }
   0xd   : > { %s1635_s16 = scalar_select %p1347_p6, 1, 0 }
   0xe   : > { %p1631_p9 = scmp.eq.s32.totalorder %s1326_s9, 0  ;;  %p1354_p10 = pnand %p1047_p7, %p226_p8 }
   0xf   : > { %s1244_s18 = smov [#allocation2]   ;;  %s1148_s23 = scalar_lea.hbm %s1625_s3, 128 }
  0x10   : > { %s1636_s17 = scalar_select %p1354_p10, 1, 0 }
  0x11   : > { %s245_s19 = sshll.u32 %s1244_s18, 4  ;;  %p1078_p11 = pneg %p1354_p10  ;;  %s246_s19 = int_to_ptr.vmem [resolvable:$true] %s245_s19 }
  0x12   : > { %p1149_p13 = scmp.ne.s32.totalorder %s1625_s3, %s1148_s23  ;;  %p1155_p3 = scmp.lt.u32.totalorder %s1148_s23, %s1625_s3 }
  0x13   : > { %p1362_p12 = pnand %p1631_p9, %p1078_p11 }
  0x15   : > { %p1150_p0 = pneg %p1362_p12 }
  0x17   : > { %p1151_p1 = pnand %p1150_p0, %p1149_p13 }
  0x19   : > { %p1152_p2 = pneg %p1151_p1 }
  0x1b   : > { %p1157_p4 = pnand %p1155_p3, %p1152_p2 }
  0x1d   : > { %1160 = shalt.err (!%p1157_p4)
}
  0x1e   : > { %s1161_s12 = scalar_lea.vmem %s246_s19, 128  ;;  %p1169_p9 = scmp.lt.s32.totalorder %s246_s19, %s246_s19 }
  0x1f   : > { %p1162_p7 = scmp.ne.s32.totalorder %s246_s19, %s1161_s12  ;;  %p1170_p6 = scmp.lt.s32.totalorder %s1161_s12, %s1161_s12 }
  0x21   : > { %p1164_p8 = pnand %p1162_p7, %p1150_p0  ;;  %p1171_p5 = por %p1170_p6, %p1169_p9 }
  0x23   : > { %p1165_p11 = pneg %p1164_p8 }
  0x25   : > { %p1172_p10 = pnand %p1171_p5, %p1165_p11 }
  0x27   : > { %1175 = shalt.err (!%p1172_p10)
}
  0x28   : > { %1081 = dma.hbm_to_vmem [thread:$0]  (!%p1362_p12), %s1625_s3, 128, %s246_s19, [#allocation3]  }
  0x29   : > { %p1638_p13 = scmp.ne.s32.totalorder %s1636_s17, 0 }
  0x2a   : > { %p1639_p1 = scmp.eq.s32.totalorder (!%p1638_p13), %s1326_s9, 0 }
  0x2b   : > { %279 = sbr.rel (%p1638_p13) target bundleno = 797 (0x31d), region = 52 }
  0x32   : > { %1221 = dma.done.wait (%p1639_p1), [#allocation3], 128   ;;  %p1640_p0 = pmov %p1639_p1 }
  0x33   : > { %s1053_s21 = sshll.u32 %s1326_s9, 2  ;;  %v1245_v0 = vmov 0.0   ;;  %v1246_v1 = vmov 0   ;;  %v1247_v2 = vmov 1   ;;  %vm337_vm0 = vcmask 1043456   ;;  %v323_v7 = vld [vmem:[%s1624_s2] sm:$0xff] }
  0x34   : > { %1223 = vsyncadd (%p1640_p0), [#allocation3], 4294967168  ;;  %p314_p6 = scmp.lt.s32.totalorder %s1053_s21, 7  ;;  %410 = vmatprep.mubr.f32.mxu0 %v1245_v0  ;;  %481 = vmatprep.mubr.f32.mxu1 %v1245_v0  ;;  %v1396_v8 = vld [vmem:[#allocation2] sm:$0xff]  ;;  %vm333_vm1 = vcmask 31744   ;;  %v1248_v10 = vmov 2   ;;  %v520_v47 = vlaneseq }
  0x35   : > { %1136 = vset.pattern.permute.xlu0 %v1246_v1  ;;  %1137 = vset.pattern.permute.xlu1 %v1247_v2  ;;  %v320_v9 = vld [vmem:[%s1623_s1] sm:$0xff]  ;;  %v1249_v11 = vmov 6   ;;  %v1250_v12 = vmov 7   ;;  %v1251_v13 = vmov 8   ;;  %v1252_v14 = vmov 4   ;;  %s1254_s10 = smov 127  }
  0x36   : > { %s1648_s21 = smov (!%p314_p6, %s1053_s21), 7  ;;  %326 = vperm.xlu0 %1136, %v323_v7   ;;  %600 = vperm.xlu1 %1137, %v1396_v8   ;;  %v1253_v15 = vmov 3   ;;  %s1255_s12 = smov 1   ;;  %v771_v41 = vld [vmem:[%s1626_s4] sm:$0xff]  ;;  %v1256_v42 = vmov 5   ;;  %v529_v50 = vshrl.u32 %v520_v47, 7 }
  0x37   : > { %s1054_s17 = sshll.u32 %s1648_s21, 2  ;;  %v1438_v51 = vand.u32 127, %v520_v47  ;;  %v504_v55 = vld [vmem:[%s1629_s7] ss:$4 sm:$0xf]  ;;  %s1258_s23 = smov 112  }
  0x38   : > { %s317_s22 = scalar_lea.vmem %s1622_s0, %s1054_s17  ;;  %v1440_v53 = vsub.s32 1, %v529_v50  ;;  %v1445_v56 = vsub.s32 2, %v529_v50  ;;  %v1448_v57 = vsub.s32 0, %v529_v50  ;;  %v1451_v60 = vsub.s32 3, %v529_v50  ;;  %s310_s17 = sand.u32 1, %s1234_s28  }
  0x39   : > { %v321_v3 = vld [vmem:[%s317_s22] sm:$0xff]  ;;  %v322_v4 = vld [vmem:[%s317_s22 + $0x8] sm:$0xff]  ;;  %vm522_vm2 = vcmp.lt.s32.totalorder %v1438_v51, 1  ;;  %vm560_vm3 = vcmp.lt.s32.totalorder %v1438_v51, 127  ;;  %s1257_s22 = smov 16   ;;  %vm631_vm4 = vcmp.lt.s32.totalorder %v1438_v51, 16 }
  0x3a   : > { %v331_v5 = vcombine.high %v321_v3, %v321_v3  ;;  %v332_v6 = vcombine.high %v322_v4, %v322_v4  ;;  %592 = vperm.xlu0 %1136, %v1396_v8   ;;  %1138 = vset.pattern.permute.xlu1 %v1248_v10  ;;  %v535_v58 = vrot.slane %v504_v55, %v1440_v53  ;;  %v1061_v61 = vld [vmem:[%s1629_s7 + $0x1] ss:$4 sm:$0xf]  ;;  %vm737_vm5 = vcmp.lt.s32.totalorder %v1438_v51, 112  ;;  %s1052_s19 = sshll.u32 %s310_s17, 4  ;;  %s1071_s20 = sshll.u32 %s1326_s9, 8 }
  0x3b   : > { %612 = vperm.xlu1 %1138, %v1396_v8   ;;  %v539_v63 = vrot.slane %v504_v55, %v1445_v56  ;;  %v531_v2 = vrot.slane %v504_v55, %v1448_v57  ;;  %vm804_vm6 = vcmask 64512   ;;  %s1580_s26 = scalar_lea.hbm %s1630_s8, %s1071_s20  ;;  %p1641_p9 = scmp.ne.s32.totalorder %s1634_s15, 0 }
  0x3c   : > { %1055 = vmatprep.subr.msk.mxu0 %vm337_vm0, %v331_v5  ;;  %1058 = vmatprep.subr.msk.mxu1 %vm337_vm0, %v332_v6  ;;  %v543_v5 = vrot.slane %v504_v55, %v1451_v60  ;;  %s1259_s9 = smov [#allocation5]  }
  0x3d   : > { %1056 = vmatpush1.msk.msra.mxu0 %vm337_vm0, %v321_v3  ;;  %1059 = vmatpush1.msk.msra.mxu1 %vm337_vm0, %v322_v4  ;;  %v569_v3 = vrot.slane %v1061_v61, %v1448_v57  ;;  %s1180_s13 = sshll.u32 %s1259_s9, 4  ;;  %s1181_s13 = int_to_ptr.vmem [resolvable:$false] %s1180_s13 }
  0x3e   : > { %1057 = vmatmul.mubr.msk.f32.vlgmr.msra.gmra.mrb[0].mxu0 %vm333_vm1, %v320_v9  ;;  %1060 = vmatmul.mubr.msk.f32.vlgmr.msra.gmra.mrb[0].mxu1 %vm333_vm1, %v320_v9  ;;  %s1182_s18 = scalar_lea.vmem %s1181_s13, 512 }
  0x3f   : > { %872 = vmatprep.mubr.f32.mxu0 %v1245_v0  ;;  %943 = vmatprep.mubr.f32.mxu1 %v1245_v0 }
  0x40   : > { %1139 = vset.pattern.permute.xlu0 %v1249_v11  ;;  %1140 = vset.pattern.permute.xlu1 %v1250_v12 }
  0x41   : > { %698 = vperm.xlu0 %1139, %v1396_v8   ;;  %706 = vperm.xlu1 %1140, %v1396_v8  }
  0x45   : > { %1141 = vset.pattern.permute.xlu1 %v1251_v13  ;;  %1142 = vset.pattern.permute.xlu0 %v1253_v15  ;;  %v573_v13 = vrot.slane %v1061_v61, %v1440_v53  ;;  %v577_v15 = vrot.slane %v1061_v61, %v1445_v56 }
  0x46   : > { %718 = vperm.xlu1 %1141, %v1396_v8  }
  0x4a   : > { %1143 = vset.pattern.permute.xlu1 %v1252_v14 }
  0xb5   : > { %v327_v16 = vpop.permute.xlu0 %326  ;;  %v601_v43 = vpop.permute.xlu1 %600 }
  0xb9   : > { %v593_v45 = vpop.permute.xlu0 %592 }
  0xba   : > { %v1430_v44 = vpop.permute.xlu1 %612 }
  0xc0   : > { %v1432_v46 = vpop.permute.xlu1 %706  ;;  %v1434_v48 = vpop.permute.xlu0 %698 }
  0xc5   : > { %v1436_v49 = vpop.permute.xlu1 %718 }
 0x111   : > { %v412_v17 = vpop.f32.mrb[0].mxu0  ;;  %v483_v18 = vpop.f32.mrb[0].mxu1 }
 0x112   : > { %v413_v19 = vadd.f32 %v412_v17, %v327_v16  ;;  %v484_v20 = vadd.f32 %v483_v18, %v327_v16  ;;  %v414_v21 = vpop.f32.mrb[1].mxu0  ;;  %v485_v22 = vpop.f32.mrb[1].mxu1 }
 0x113   : > { %v415_v23 = vadd.f32 %v414_v21, %v327_v16  ;;  %v486_v24 = vadd.f32 %v485_v22, %v327_v16  ;;  %v581_v16 = vrot.slane %v1061_v61, %v1451_v60 }
 0x114   : > { %v488_v25 = vadd.f32 3.0, %v413_v19  ;;  %v490_v26 = vadd.f32 3.0, %v484_v20 }
 0x115   : > { %v489_v27 = vadd.f32 3.0, %v415_v23  ;;  %v491_v29 = vadd.f32 3.0, %v486_v24 }
 0x116   : > { %v492_v28 = vmax.f32 %v488_v25, 0.0  ;;  %v494_v30 = vmax.f32 %v490_v26, 0.0 }
 0x117   : > { %v493_v31 = vmax.f32 %v489_v27, 0.0  ;;  %v495_v35 = vmax.f32 %v491_v29, 0.0 }
 0x118   : > { %v496_v32 = vmin.f32 %v492_v28, 6.0  ;;  %v498_v36 = vmin.f32 %v494_v30, 6.0 }
 0x119   : > { %v497_v34 = vmin.f32 %v493_v31, 6.0  ;;  %v499_v38 = vmin.f32 %v495_v35, 6.0 }
 0x11a   : > { %v1407_v33 = vmul.f32 %v496_v32, %v413_v19  ;;  %v1413_v39 = vmul.f32 %v498_v36, %v484_v20 }
 0x11b   : > { %v1411_v37 = vmul.f32 %v497_v34, %v415_v23  ;;  %v1417_v40 = vmul.f32 %v499_v38, %v486_v24 }
 0x11c   : > { %552 = vrot.lane.b32.xlu0 %v1407_v33, %s1254_s10  ;;  %512 = vrot.lane.b32.xlu1 %v1407_v33, %s1255_s12  ;;  %v603_v17 = vmul.f32 %v601_v43, %v1407_v33  ;;  %v605_v31 = vmul.f32 %v601_v43, %v1413_v39 }
 0x11d   : > { %v604_v22 = vmul.f32 %v601_v43, %v1411_v37 }
 0x120   : > { %514 = vrot.lane.b32.xlu0 %v1411_v37, %s1255_s12  ;;  %516 = vrot.lane.b32.xlu1 %v1413_v39, %s1255_s12 }
 0x124   : > { %518 = vrot.lane.b32.xlu0 %v1417_v40, %s1255_s12  ;;  %554 = vrot.lane.b32.xlu1 %v1411_v37, %s1254_s10 }
 0x128   : > { %556 = vrot.lane.b32.xlu0 %v1413_v39, %s1254_s10  ;;  %558 = vrot.lane.b32.xlu1 %v1417_v40, %s1254_s10  ;;  %s961_s10 = scalar_lea.sflag [#allocation4], %s310_s17 }
 0x12c   : > { %662 = vperm.xlu0 %1142, %v1396_v8   ;;  %670 = vperm.xlu1 %1143, %v1396_v8  }
 0x130   : > { %1145 = vset.pattern.permute.xlu0 %v1246_v1  ;;  %1144 = vset.pattern.permute.xlu1 %v1256_v42  ;;  %v606_v42 = vmul.f32 %v601_v43, %v1417_v40  ;;  %v711_v43 = vmul.f32 %v1432_v46, %v1413_v39 }
 0x131   : > { %774 = vperm.xlu0 %1145, %v771_v41   ;;  %682 = vperm.xlu1 %1144, %v1396_v8  }
 0x18e   : > { %v553_v52 = vpop.permute.xlu0 %552  ;;  %v513_v54 = vpop.permute.xlu1 %512 }
 0x192   : > { %v515_v59 = vpop.permute.xlu0 %514  ;;  %v517_v0 = vpop.permute.xlu1 %516 }
 0x193   : > { %v525_v62 = vsel %vm522_vm2, %v513_v54, %v515_v59  ;;  %v524_v1 = vsel %vm522_vm2, %v515_v59, %v517_v0 }
 0x194   : > { %v1464_v4 = vmul.f32 %v535_v58, %v525_v62  ;;  %v1467_v7 = vmul.f32 %v539_v63, %v524_v1  ;;  %v709_v58 = vmul.f32 %v1432_v46, %v1407_v33 }
 0x196   : > { %v519_v6 = vpop.permute.xlu0 %518  ;;  %v555_v10 = vpop.permute.xlu1 %554  ;;  %v596_v18 = vmul.f32 %v593_v45, %v1464_v4  ;;  %v597_v23 = vmul.f32 %v593_v45, %v1467_v7  ;;  %v703_v47 = vmul.f32 %v1434_v48, %v1467_v7 }
 0x197   : > { %v523_v8 = vsel %vm522_vm2, %v517_v0, %v519_v6  ;;  %v526_v9 = vsel %vm522_vm2, %v519_v6, %v513_v54  ;;  %v563_v12 = vsel %vm560_vm3, %v553_v52, %v555_v10 }
 0x198   : > { %v1473_v11 = vmul.f32 %v531_v2, %v526_v9  ;;  %v1478_v14 = vmul.f32 %v569_v3, %v563_v12  ;;  %v551_v19 = vmul.f32 %v543_v5, %v523_v8  ;;  %v608_v38 = vadd.f32 %v604_v22, %v596_v18  ;;  %v798_v9 = vld [vmem:[%s1628_s6] sm:$0xf] }
 0x199   : > { %v609_v55 = vadd.f32 %v605_v31, %v597_v23  ;;  %v715_v0 = vadd.f32 %v711_v43, %v703_v47  ;;  %v702_v2 = vmul.f32 %v1434_v48, %v1464_v4  ;;  %v710_v5 = vmul.f32 %v1432_v46, %v1411_v37  ;;  %v1063_v47 = vld [vmem:[%s1629_s7 + $0x3] ss:$4 sm:$0xf] }
 0x19a   : > { %v595_v20 = vmul.f32 %v593_v45, %v1473_v11  ;;  %v557_v21 = vpop.permute.xlu0 %556  ;;  %v559_v25 = vpop.permute.xlu1 %558  ;;  %v615_v26 = vmul.f32 %v1430_v44, %v1478_v14  ;;  %v598_v35 = vmul.f32 %v593_v45, %v551_v19  ;;  %v721_v3 = vmul.f32 %v1436_v49, %v1478_v14 }
 0x19b   : > { %v562_v24 = vsel %vm560_vm3, %v555_v10, %v557_v21  ;;  %v561_v28 = vsel %vm560_vm3, %v557_v21, %v559_v25  ;;  %v564_v29 = vsel %vm560_vm3, %v559_v25, %v553_v52  ;;  %v701_v52 = vmul.f32 %v1434_v48, %v1473_v11 }
 0x19c   : > { %v1491_v27 = vmul.f32 %v573_v13, %v562_v24  ;;  %v607_v30 = vadd.f32 %v603_v17, %v595_v20  ;;  %v588_v32 = vmul.f32 %v577_v15, %v561_v28  ;;  %v589_v34 = vmul.f32 %v581_v16, %v564_v29 }
 0x19d   : > { %v610_v61 = vadd.f32 %v606_v42, %v598_v35  ;;  %v713_v1 = vadd.f32 %v709_v58, %v701_v52  ;;  %v714_v10 = vadd.f32 %v710_v5, %v702_v2  ;;  %v704_v12 = vmul.f32 %v1434_v48, %v551_v19  ;;  %v1062_v42 = vld [vmem:[%s1629_s7 + $0x2] ss:$4 sm:$0xf] }
 0x19e   : > { %v619_v36 = vadd.f32 %v615_v26, %v607_v30  ;;  %v616_v41 = vmul.f32 %v1430_v44, %v1491_v27  ;;  %v617_v50 = vmul.f32 %v1430_v44, %v588_v32  ;;  %v618_v45 = vmul.f32 %v1430_v44, %v589_v34 }
 0x19f   : > { %v723_v62 = vmul.f32 %v1436_v49, %v588_v32  ;;  %v722_v6 = vmul.f32 %v1436_v49, %v1491_v27  ;;  %v725_v8 = vadd.f32 %v721_v3, %v713_v1  ;;  %v712_v13 = vmul.f32 %v1432_v46, %v1417_v40 }
 0x1a0   : > { %623 = vrot.lane.b32.xlu0 %v619_v36, %s1257_s22  ;;  %v620_v54 = vadd.f32 %v616_v41, %v608_v38  ;;  %v621_v59 = vadd.f32 %v617_v50, %v609_v55  ;;  %v622_v63 = vadd.f32 %v618_v45, %v610_v61  ;;  %v724_v17 = vmul.f32 %v1436_v49, %v589_v34 }
 0x1a1   : > { %v727_v44 = vadd.f32 %v723_v62, %v715_v0  ;;  %v726_v16 = vadd.f32 %v722_v6, %v714_v10  ;;  %v716_v49 = vadd.f32 %v712_v13, %v704_v12  ;;  %v652_v45 = vrot.slane %v1062_v42, %v1451_v60 }
 0x1a2   : > { %625 = vrot.lane.b32.xlu1 %v620_v54, %s1257_s22  ;;  %v648_v54 = vrot.slane %v1062_v42, %v1445_v56  ;;  %v746_v58 = vrot.slane %v1063_v47, %v1448_v57  ;;  %v750_v43 = vrot.slane %v1063_v47, %v1440_v53  ;;  %v754_v2 = vrot.slane %v1063_v47, %v1445_v56 }
 0x1a3   : > { %v728_v26 = vadd.f32 %v724_v17, %v716_v49 }
 0x1a4   : > { %627 = vrot.lane.b32.xlu0 %v621_v59, %s1257_s22 }
 0x1a6   : > { %629 = vrot.lane.b32.xlu1 %v622_v63, %s1257_s22  ;;  %s312_s22 = scalar_lea.vmem [#allocation5], %s1052_s19 }
 0x1a8   : > { %733 = vrot.lane.b32.xlu0 %v727_v44, %s1258_s23  ;;  %v758_v44 = vrot.slane %v1063_v47, %v1451_v60 }
 0x1aa   : > { %729 = vrot.lane.b32.xlu1 %v725_v8, %s1258_s23 }
 0x1ab   : > { %v663_v15 = vpop.permute.xlu0 %662  ;;  %v671_v23 = vpop.permute.xlu1 %670 }
 0x1ac   : > { %v665_v18 = vmul.f32 %v663_v15, %v1473_v11  ;;  %v666_v20 = vmul.f32 %v663_v15, %v1464_v4  ;;  %v667_v21 = vmul.f32 %v663_v15, %v1467_v7  ;;  %v668_v22 = vmul.f32 %v663_v15, %v551_v19  ;;  %801 = vperm.xlu0 %1145, %v798_v9  }
 0x1ad   : > { %v673_v48 = vmul.f32 %v671_v23, %v1407_v33  ;;  %v674_v24 = vmul.f32 %v671_v23, %v1411_v37  ;;  %v675_v25 = vmul.f32 %v671_v23, %v1413_v39  ;;  %v676_v46 = vmul.f32 %v671_v23, %v1417_v40 }
 0x1ae   : > { %731 = vrot.lane.b32.xlu1 %v726_v16, %s1258_s23 }
 0x1af   : > { %v677_v11 = vadd.f32 %v673_v48, %v665_v18  ;;  %v678_v28 = vadd.f32 %v674_v24, %v666_v20  ;;  %v679_v4 = vadd.f32 %v675_v25, %v667_v21  ;;  %v680_v29 = vadd.f32 %v676_v46, %v668_v22 }
 0x1b0   : > { %v683_v7 = vpop.permute.xlu1 %682  ;;  %v775_v36 = vpop.permute.xlu0 %774 }
 0x1b1   : > { %v685_v19 = vmul.f32 %v683_v7, %v1478_v14  ;;  %v686_v30 = vmul.f32 %v683_v7, %v1491_v27  ;;  %v687_v33 = vmul.f32 %v683_v7, %v588_v32  ;;  %v688_v31 = vmul.f32 %v683_v7, %v589_v34 }
 0x1b2   : > { %735 = vrot.lane.b32.xlu1 %v728_v26, %s1258_s23  ;;  %v644_v27 = vrot.slane %v1062_v42, %v1440_v53  ;;  %v640_v34 = vrot.slane %v1062_v42, %v1448_v57  ;;  %s975_s23 = sshll.u32 %s312_s22, 4  ;;  %s1582_s23 = int_to_ptr.vmem [resolvable:$true] %s975_s23 }
 0x1b3   : > { %v690_v37 = vadd.f32 %v686_v30, %v678_v28  ;;  %v691_v39 = vadd.f32 %v687_v33, %v679_v4  ;;  %v689_v40 = vadd.f32 %v685_v19, %v677_v11  ;;  %v692_v35 = vadd.f32 %v688_v31, %v680_v29  ;;  %v797_v31 = vld [vmem:[%s1627_s5] sm:$0xf]  ;;  %s1176_s12 = scalar_lea.vmem %s1582_s23, 256  ;;  %p1183_p2 = scmp.lt.s32.totalorder %s1582_s23, %s1181_s13 }
 0x1b4   : > { %p1177_p5 = scmp.ne.s32.totalorder %s1582_s23, %s1176_s12  ;;  %p1184_p3 = scmp.lt.s32.totalorder %s1182_s18, %s1176_s12 }
 0x1b6   : > { %p1178_p10 = pnand %p1177_p5, %p1641_p9  ;;  %p1185_p4 = por %p1184_p3, %p1183_p2 }
 0x1b8   : > { %p1179_p12 = pneg %p1178_p10 }
 0x1ba   : > { %p1186_p7 = pnand %p1185_p4, %p1179_p12 }
 0x212   : > { %v624_v38 = vpop.permute.xlu0 %623 }
 0x214   : > { %v626_v41 = vpop.permute.xlu1 %625 }
 0x215   : > { %v634_v50 = vsel %vm631_vm4, %v624_v38, %v626_v41 }
 0x216   : > { %v628_v32 = vpop.permute.xlu0 %627  ;;  %v658_v59 = vmul.f32 %v644_v27, %v634_v50 }
 0x217   : > { %v633_v61 = vsel %vm631_vm4, %v626_v41, %v628_v32 }
 0x218   : > { %v630_v14 = vpop.permute.xlu1 %629  ;;  %v659_v3 = vmul.f32 %v648_v54, %v633_v61  ;;  %v694_v6 = vadd.f32 %v690_v37, %v658_v59 }
 0x219   : > { %v635_v52 = vsel %vm631_vm4, %v630_v14, %v624_v38  ;;  %v632_v62 = vsel %vm631_vm4, %v628_v32, %v630_v14 }
 0x21a   : > { %v657_v63 = vmul.f32 %v640_v34, %v635_v52  ;;  %v734_v0 = vpop.permute.xlu0 %733  ;;  %v660_v5 = vmul.f32 %v652_v45, %v632_v62  ;;  %v695_v16 = vadd.f32 %v691_v39, %v659_v3 }
 0x21c   : > { %v730_v55 = vpop.permute.xlu1 %729  ;;  %v693_v8 = vadd.f32 %v689_v40, %v657_v63  ;;  %v696_v17 = vadd.f32 %v692_v35, %v660_v5 }
 0x220   : > { %v732_v1 = vpop.permute.xlu1 %731 }
 0x221   : > { %v739_v57 = vsel %vm737_vm5, %v732_v1, %v734_v0  ;;  %v740_v53 = vsel %vm737_vm5, %v730_v55, %v732_v1 }
 0x222   : > { %v763_v9 = vmul.f32 %v746_v58, %v740_v53  ;;  %v764_v10 = vmul.f32 %v750_v43, %v739_v57 }
 0x224   : > { %v767_v12 = vadd.f32 %v763_v9, %v693_v8  ;;  %v768_v13 = vadd.f32 %v764_v10, %v694_v6  ;;  %v736_v15 = vpop.permute.xlu1 %735 }
 0x225   : > { %v738_v56 = vsel %vm737_vm5, %v734_v0, %v736_v15  ;;  %v741_v60 = vsel %vm737_vm5, %v736_v15, %v730_v55 }
 0x226   : > { %v777_v18 = vadd.f32 %v775_v36, %v767_v12  ;;  %v765_v20 = vmul.f32 %v754_v2, %v738_v56  ;;  %v766_v21 = vmul.f32 %v758_v44, %v741_v60  ;;  %v778_v22 = vadd.f32 %v775_v36, %v768_v13 }
 0x228   : > { %v781_v23 = vadd.f32 3.0, %v777_v18  ;;  %v769_v48 = vadd.f32 %v765_v20, %v695_v16  ;;  %v770_v24 = vadd.f32 %v766_v21, %v696_v17  ;;  %v782_v25 = vadd.f32 3.0, %v778_v22 }
 0x22a   : > { %v785_v46 = vmax.f32 %v781_v23, 0.0  ;;  %v779_v49 = vadd.f32 %v775_v36, %v769_v48  ;;  %v786_v26 = vmax.f32 %v782_v25, 0.0  ;;  %v780_v11 = vadd.f32 %v775_v36, %v770_v24 }
 0x22b   : > { %v802_v36 = vpop.permute.xlu0 %801 }
 0x22c   : > { %v783_v28 = vadd.f32 3.0, %v779_v49  ;;  %v790_v4 = vmin.f32 %v786_v26, 6.0  ;;  %v789_v29 = vmin.f32 %v785_v46, 6.0  ;;  %v784_v7 = vadd.f32 3.0, %v780_v11 }
 0x22e   : > { %v787_v19 = vmax.f32 %v783_v28, 0.0  ;;  %v794_v51 = vmul.f32 %v790_v4, %v778_v22  ;;  %v793_v30 = vmul.f32 %v789_v29, %v777_v18  ;;  %v788_v33 = vmax.f32 %v784_v7, 0.0 }
 0x230   : > { %808 = vmatprep.subr.mxu0 %v794_v51  ;;  %v792_v37 = vmin.f32 %v788_v33, 6.0  ;;  %v791_v39 = vmin.f32 %v787_v19, 6.0 }
 0x231   : > { %809 = vmatpush1.msra.mxu0 %v793_v30 }
 0x232   : > { %1064 = vmatmul.mubr.msk.f32.vlgmr.msra.gmra.mrb[2].mxu0 %vm804_vm6, %v797_v31  ;;  %v796_v40 = vmul.f32 %v792_v37, %v780_v11  ;;  %v795_v35 = vmul.f32 %v791_v39, %v779_v49 }
 0x234   : > { %879 = vmatprep.subr.mxu1 %v796_v40 }
 0x235   : > { %880 = vmatpush1.msra.mxu1 %v795_v35 }
 0x236   : > { %1065 = vmatmul.mubr.msk.f32.vlgmr.msra.gmra.mrb[2].mxu1 %vm804_vm6, %v797_v31 }
 0x305   : > { %v874_v38 = vpop.f32.mrb[2].mxu0 }
 0x306   : > { %v875_v41 = vadd.f32 %v874_v38, %v802_v36  ;;  %v876_v42 = vpop.f32.mrb[3].mxu0 }
 0x307   : > { %v877_v14 = vadd.f32 %v876_v42, %v802_v36 }
 0x309   : > { %v954_v27 = vcombine.low %v875_v41, %v877_v14  ;;  %v945_v32 = vpop.f32.mrb[2].mxu1 }
 0x30a   : > { %v946_v34 = vadd.f32 %v945_v32, %v802_v36  ;;  %v947_v47 = vpop.f32.mrb[3].mxu1 }
 0x30b   : > { %958 = vst [vmem:[%s312_s22] sm:$0xff] %v954_v27  ;;  %v948_v50 = vadd.f32 %v947_v47, %v802_v36 }
 0x30d   : > { %v955_v52 = vcombine.low %v946_v34, %v948_v50 }
 0x30f   : > { %959 = vst [vmem:[%s312_s22 + $0x8] sm:$0xff] %v955_v52 }
 0x310   : > { %1189 = shalt.err (!%p1186_p7)
}
 0x311   : > { %s1190_s21 = scalar_lea.hbm %s1580_s26, 256  ;;  %s1194_s20 = scalar_lea.hbm %s1630_s8, 512 }
 0x312   : > { %p1191_p8 = scmp.ne.s32.totalorder %s1580_s26, %s1190_s21  ;;  %p1195_p1 = scmp.lt.u32.totalorder %s1580_s26, %s1630_s8 }
 0x313   : > { %p1196_p0 = scmp.lt.u32.totalorder %s1194_s20, %s1190_s21  ;;  %p1198_p5 = scmp.lt.u32.totalorder %s1190_s21, %s1580_s26 }
 0x314   : > { %p1192_p11 = pnand %p1191_p8, %p1641_p9 }
 0x315   : > { %p1197_p6 = por %p1196_p0, %p1195_p1 }
 0x316   : > { %p1193_p13 = pneg %p1192_p11 }
 0x317   : > { %p1199_p10 = por %p1198_p5, %p1197_p6 }
 0x319   : > { %p1200_p12 = pnand %p1199_p10, %p1193_p13 }
 0x31b   : > { %1203 = shalt.err (!%p1200_p12)
}
 0x31c   : > { %1076 = dma.vmem_to_hbm [thread:$0]  (%p1641_p9), %s1582_s23, 256, %s1580_s26, %s961_s10  }
 0x31d PF: > { %p1088_p2 = scmp.ge.s32.totalorder %s1242_s30, 2  ;;  %s987_s25 = sand.u32 1, %s1230_s27  }
 0x31e   : > { %p1642_p3 = scmp.ne.s32.totalorder %s1635_s16, 0  ;;  %s988_s12 = scalar_lea.sflag [#allocation4], %s987_s25 }
 0x320   : > { %p1083_p4 = pnand %p1088_p2, %p1642_p3 }
 0x322   : > { %1225 = dma.done.wait (!%p1083_p4), %s988_s12, 256  }
 0x323   : > { %1227 = vsyncadd (!%p1083_p4), %s988_s12, 4294967040  ;;  %p19_p7 = scmp.ge.s32.totalorder %s1330_s11, 4   ;;  %s1643_s27 = smov %s1234_s28 }
 0x324   : > { %s1644_s28 = smov %s1238_s29  ;;  %s1645_s29 = smov %s1341_s14 }
 0x325   : > { %s1646_s30 = smov %s1330_s11  ;;  %21 = sbr.rel (!%p19_p7) target bundleno = 4 (0x4), region = 95 }
 0x32c   :  { %993 = vsyncpa [#allocation3], 1 }
 0x32d   :  { %995 = vsyncpa [#allocation3 + $0x1], 1 }
 0x32e   :  { %996 = vsyncpa [#allocation4], 1 }
 0x32f   :  { %998 = vsyncpa [#allocation4 + $0x1], 1 }

</bundles_post_ra>
